<compile_context>
chip_gen: v6e
topology: v6e:2x2x1
jax: 0.10.0
libtpu: 0.0.40
codegen_flags: <defaults>
</compile_context>

<pallas_src>
import math

import jax
import jax.numpy as jnp
from jax.experimental import pallas as pl
from jax.experimental.pallas import tpu as pltpu


def _round_up(a, b):
    return pl.cdiv(a, b) * b


def gcn_kernel(adj_ref, x_ref, wt_ref, out_ref, acc_ref):
    """Grid is (row_tiles, k_tiles); k is the reduction over adjacency columns."""
    k = pl.program_id(1)
    tk = adj_ref.shape[1]

    @pl.when(k == 0)
    def _():
        acc_ref[...] = jnp.zeros_like(acc_ref)

    # x may be fully VMEM-resident (constant block) or a per-k slab.
    if x_ref.shape[0] == tk:
        xk = x_ref[...]
    else:
        start = pl.multiple_of(k * tk, tk)
        xk = x_ref[pl.ds(start, tk), :]

    # Accumulate (adj @ [x|1]) over k:  [TM, TK] @ [TK, F_aug] -> [TM, F_aug]
    acc_ref[...] += jnp.dot(adj_ref[...], xk, preferred_element_type=jnp.float32)

    # TODO(synk): dropout is identity (eval mode); training-mode dropout would
    # use pltpu.prng_seed / pltpu.stateful_bernoulli on the hidden activations.

    @pl.when(k == pl.num_programs(1) - 1)
    def _():
        # support = (adj @ [x|1]) @ [[W^T],[b]] ;  out = ReLU(support)
        support = jnp.dot(
            acc_ref[...], wt_ref[...], preferred_element_type=jnp.float32
        )
        out_ref[...] = jnp.maximum(support, 0.0).astype(out_ref.dtype)


def graph_convolution(x, weight, bias, adj, *, tm=512, tk=1024):
    """x: [N, F_in], weight: [F_out, F_in], bias: [F_out], adj: [N, N] -> [N, F_out]."""
    n, f_in = x.shape
    f_out = weight.shape[0]

    # Lane-dense padded feature dims (ones/bias column lives inside the padding).
    f_aug = _round_up(f_in + 1, 128)
    f_out_pad = _round_up(f_out, 128)

    # Clamp tiles to the (128-padded) problem size; keep >= 2 row tiles when
    # possible so both v7x TensorCores get work on the "parallel" axis.
    n128 = _round_up(n, 128)
    tm = min(tm, n128)
    tk = min(tk, n128)
    if n128 // tm < 2 and n128 >= 256:
        tm = _round_up(n128 // 2, 128)

    # Pad rows and columns independently (no over-padding with asymmetric tiles).
    n_rows_pad = _round_up(n, tm)
    n_cols_pad = _round_up(n, tk)

    # Augmented inputs: x_aug = [x | 1], wt_aug = [[W^T], [b]], zero-padded.
    x_aug = jnp.concatenate([x, jnp.ones((n, 1), x.dtype)], axis=1)
    x_aug = jnp.pad(x_aug, ((0, n_cols_pad - n), (0, f_aug - (f_in + 1))))
    wt_aug = jnp.concatenate(
        [weight.T.astype(jnp.float32), bias.reshape(1, f_out).astype(jnp.float32)],
        axis=0,
    )
    wt_aug = jnp.pad(wt_aug, ((0, f_aug - (f_in + 1)), (0, f_out_pad - f_out)))

    adj_p = jnp.pad(adj, ((0, n_rows_pad - n), (0, n_cols_pad - n)))

    # Dominant HBM stream in bf16; MXU still accumulates in f32.
    adj_c = adj_p.astype(jnp.bfloat16)
    x_c = x_aug.astype(jnp.bfloat16)

    # Keep augmented x fully VMEM-resident when it is small.
    x_resident = (n_cols_pad * f_aug * 2) <= 8 * 1024 * 1024
    if x_resident:
        x_spec = pl.BlockSpec((n_cols_pad, f_aug), lambda i, k: (0, 0))
    else:
        x_spec = pl.BlockSpec((tk, f_aug), lambda i, k: (k, 0))

    grid = (n_rows_pad // tm, n_cols_pad // tk)

    out = pl.pallas_call(
        gcn_kernel,
        out_shape=jax.ShapeDtypeStruct((n_rows_pad, f_out_pad), x.dtype),
        grid_spec=pltpu.PrefetchScalarGridSpec(
            num_scalar_prefetch=0,
            grid=grid,
            in_specs=[
                pl.BlockSpec((tm, tk), lambda i, k: (i, k)),            # adj tile
                x_spec,                                                  # [x|1]
                pl.BlockSpec((f_aug, f_out_pad), lambda i, k: (0, 0)),  # [[W^T],[b]]
            ],
            out_specs=pl.BlockSpec((tm, f_out_pad), lambda i, k: (i, 0)),
            scratch_shapes=[
                pltpu.VMEM((tm, f_aug), jnp.float32),   # (adj @ [x|1]) accumulator
            ],
        ),
        compiler_params=pltpu.CompilerParams(
            dimension_semantics=("parallel", "arbitrary"),
            vmem_limit_bytes=48 * 1024 * 1024,
        ),
    )(adj_c, x_c, wt_aug)

    return out[:n, :f_out]


def reference(x, weight, bias, adj):
    hidden = x @ weight.T + bias
    support = adj @ hidden
    return jnp.maximum(support, 0.0)


if __name__ == "__main__":
    key = jax.random.PRNGKey(0)
    k_x, k_adj, k_w, k_b = jax.random.split(key, 4)

    N = 256           # number of graph nodes
    F_IN = 32         # in_features
    F_OUT = 128       # out_features

    x = jax.random.normal(k_x, (N, F_IN), dtype=jnp.float32)

    # Dense adjacency (row-normalized random graph with self-loops).
    adj_raw = (jax.random.uniform(k_adj, (N, N)) > 0.7).astype(jnp.float32)
    adj_raw = adj_raw + jnp.eye(N, dtype=jnp.float32)
    adj = adj_raw / jnp.sum(adj_raw, axis=1, keepdims=True)

    # Deterministic parameter init mimicking nn.Linear defaults:
    # U(-1/sqrt(F_IN), 1/sqrt(F_IN)) for both weight and bias.
    bound = 1.0 / math.sqrt(F_IN)
    weight = jax.random.uniform(
        k_w, (F_OUT, F_IN), minval=-bound, maxval=bound, dtype=jnp.float32
    )
    bias = jax.random.uniform(
        k_b, (F_OUT,), minval=-bound, maxval=bound, dtype=jnp.float32
    )

    out = graph_convolution(x, weight, bias, adj)
    out = jax.block_until_ready(out)

    ref = reference(x, weight, bias, adj)
    assert out.shape == (N, F_OUT)
    # bf16 adjacency stream -> small, bounded drift vs the f32 reference.
    assert jnp.allclose(out, ref, atol=2e-2, rtol=2e-2), "mismatch vs reference"

    print("KERNEL_OK")
</pallas_src>

<mosaic_0001>
module attributes {stable_mosaic.version = 11 : i64} {
  func.func @gcn_kernel(%arg0: i32, %arg1: i32, %arg2: memref<128x256xbf16, #tpu.memory_space<vmem>>, %arg3: memref<256x128xbf16, #tpu.memory_space<vmem>>, %arg4: memref<128x128xf32, #tpu.memory_space<vmem>>, %arg5: memref<128x128xf32, #tpu.memory_space<vmem>>, %arg6: memref<128x128xf32, #tpu.memory_space<vmem>>) attributes {dimension_semantics = [#tpu.dimension_semantics<parallel>, #tpu.dimension_semantics<arbitrary>], iteration_bounds = array<i64: 2, 1>, scalar_prefetch = 0 : i64, scratch_operands = 1 : i64, tpu.core_type = #tpu.core_type<tc>, window_params = [{transform_indices = @transform_0, window_bounds = array<i64: 128, 256>}, {pipeline_mode = #tpu.pipeline_mode<synchronous>, transform_indices = @transform_1, window_bounds = array<i64: 256, 128>}, {pipeline_mode = #tpu.pipeline_mode<synchronous>, transform_indices = @transform_2, window_bounds = array<i64: 128, 128>}, {transform_indices = @transform_3, window_bounds = array<i64: 128, 128>}]} {
    %c0_i32 = arith.constant 0 : i32
    %0 = arith.cmpi eq, %arg1, %c0_i32 : i32
    %1 = arith.extui %0 : i1 to i32
    %c0_i32_0 = arith.constant 0 : i32
    %2 = arith.cmpi ne, %1, %c0_i32_0 : i32
    scf.if %2 {
      %cst_10 = arith.constant 0.000000e+00 : f32
      %12 = vector.broadcast %cst_10 : f32 to vector<128x128xf32>
      %c0_11 = arith.constant 0 : index
      %c0_12 = arith.constant 0 : index
      %13 = vector.load %arg6[%c0_11, %c0_12] : memref<128x128xf32, #tpu.memory_space<vmem>>, vector<128x128xf32>
      tpu.vector_store %arg6[%c0_11, %c0_12], %12 {strides = array<i32>} : memref<128x128xf32, #tpu.memory_space<vmem>>, vector<128x128xf32>,
    } else {
    }
    %c0 = arith.constant 0 : index
    %c0_1 = arith.constant 0 : index
    %3 = vector.load %arg3[%c0, %c0_1] : memref<256x128xbf16, #tpu.memory_space<vmem>>, vector<256x128xbf16>
    %c0_2 = arith.constant 0 : index
    %c0_3 = arith.constant 0 : index
    %4 = vector.load %arg6[%c0_2, %c0_3] : memref<128x128xf32, #tpu.memory_space<vmem>>, vector<128x128xf32>
    %c0_4 = arith.constant 0 : index
    %c0_5 = arith.constant 0 : index
    %5 = vector.load %arg2[%c0_4, %c0_5] : memref<128x256xbf16, #tpu.memory_space<vmem>>, vector<128x256xbf16>
    %cst = arith.constant dense<0.000000e+00> : vector<128x128xf32>
    %6 = tpu.matmul %5, %3, %cst {dimension_numbers = #tpu.dot_dimension_numbers<[1], [0], [0], [1], [0, 0, 1, 1], [], []>} : vector<128x256xbf16>, vector<256x128xbf16>, vector<128x128xf32> -> vector<128x128xf32>
    %7 = arith.addf %4, %6 : vector<128x128xf32>
    %c0_6 = arith.constant 0 : index
    %c0_7 = arith.constant 0 : index
    %8 = vector.load %arg6[%c0_6, %c0_7] : memref<128x128xf32, #tpu.memory_space<vmem>>, vector<128x128xf32>
    tpu.vector_store %arg6[%c0_6, %c0_7], %7 {strides = array<i32>} : memref<128x128xf32, #tpu.memory_space<vmem>>, vector<128x128xf32>,
    %c0_i32_8 = arith.constant 0 : i32
    %9 = arith.cmpi eq, %arg1, %c0_i32_8 : i32
    %10 = arith.extui %9 : i1 to i32
    %c0_i32_9 = arith.constant 0 : i32
    %11 = arith.cmpi ne, %10, %c0_i32_9 : i32
    scf.if %11 {
      %c0_10 = arith.constant 0 : index
      %c0_11 = arith.constant 0 : index
      %12 = vector.load %arg6[%c0_10, %c0_11] : memref<128x128xf32, #tpu.memory_space<vmem>>, vector<128x128xf32>
      %c0_12 = arith.constant 0 : index
      %c0_13 = arith.constant 0 : index
      %13 = vector.load %arg4[%c0_12, %c0_13] : memref<128x128xf32, #tpu.memory_space<vmem>>, vector<128x128xf32>
      %cst_14 = arith.constant dense<0.000000e+00> : vector<128x128xf32>
      %14 = tpu.matmul %12, %13, %cst_14 {dimension_numbers = #tpu.dot_dimension_numbers<[1], [0], [0], [1], [0, 0, 1, 1], [], []>} : vector<128x128xf32>, vector<128x128xf32>, vector<128x128xf32> -> vector<128x128xf32>
      %cst_15 = arith.constant 0.000000e+00 : f32
      %15 = vector.broadcast %cst_15 : f32 to vector<128x128xf32>
      %16 = arith.maximumf %14, %15 : vector<128x128xf32>
      %c0_16 = arith.constant 0 : index
      %c0_17 = arith.constant 0 : index
      %17 = vector.load %arg5[%c0_16, %c0_17] : memref<128x128xf32, #tpu.memory_space<vmem>>, vector<128x128xf32>
      tpu.vector_store %arg5[%c0_16, %c0_17], %16 {strides = array<i32>} : memref<128x128xf32, #tpu.memory_space<vmem>>, vector<128x128xf32>,
    } else {
    }
    return
  }
  func.func @transform_0(%arg0: i32, %arg1: i32) -> (i32, i32) {
    %c0_i32 = arith.constant 0 : i32
    return %arg0, %arg1 : i32, i32
  }
  func.func @transform_1(%arg0: i32, %arg1: i32) -> (i32, i32) {
    %c0_i32 = arith.constant 0 : i32
    %c0_i32_0 = arith.constant 0 : i32
    %c0_i32_1 = arith.constant 0 : i32
    return %c0_i32, %c0_i32_0 : i32, i32
  }
  func.func @transform_2(%arg0: i32, %arg1: i32) -> (i32, i32) {
    %c0_i32 = arith.constant 0 : i32
    %c0_i32_0 = arith.constant 0 : i32
    %c0_i32_1 = arith.constant 0 : i32
    return %c0_i32, %c0_i32_0 : i32, i32
  }
  func.func @transform_3(%arg0: i32, %arg1: i32) -> (i32, i32) {
    %c0_i32 = arith.constant 0 : i32
    %c0_i32_0 = arith.constant 0 : i32
    return %arg0, %c0_i32 : i32, i32
  }
}

</mosaic_0001>

<bundles_post_ra>
// kernel: tpu_custom_call.1
= control target key start
LH: loop header
LB: loop body
LE: loop exit
PB: predicated region body
PF: predicated region fallthrough
CT: control target
= control target key end

     0   :  { %8 = vsyncpa [#allocation4], 0  ;;  %s1724_s0 = inlined_call_operand.hbm [shape: bf16[256,256], index: 0, kind: input, shape index: {}]   ;;  %s1725_s1 = inlined_call_operand.hbm [shape: bf16[256,128], index: 1, kind: input, shape index: {}]   ;;  %s1726_s2 = inlined_call_operand.hbm [shape: f32[128,128], index: 2, kind: input, shape index: {}]   ;;  %s1727_s3 = inlined_call_operand.hbm [shape: f32[256,128], index: 3, kind: output, shape index: {}]  }
   0x1   :  { %10 = vsyncpa [#allocation4 + $0x1], 0 }
   0x2   :  { %11 = vsyncpa [#allocation7], 0 }
   0x3   :  { %12 = vsyncpa [#allocation5], 0 }
   0x4   :  { %14 = vsyncpa [#allocation5 + $0x1], 0  ;;  %s1489_s12 = smov 0   ;;  %s1491_s13 = smov 0  }
   0x5   :  { %s1493_s14 = smov 0   ;;  %s1495_s15 = smov 0  }
   0x6   :  { %s1497_s16 = smov 0   ;;  %s1499_s17 = smov 0  }
   0x7 LB: > { %s957_s18 = sadd.s32 4294967295, %s1457_s17   ;;  %s958_s19 = sadd.s32 4294967294, %s1457_s17   ;;  %s1457_s17 = sphi %s1499_s17, %s20_s17   ;;  %s1453_s16 = sphi %s1497_s16, %s1749_s16   ;;  %s1449_s15 = sphi %s1495_s15, %s1748_s15   ;;  %s1445_s14 = sphi %s1493_s14, %s1747_s14   ;;  %s1441_s13 = sphi %s1491_s13, %s1746_s13   ;;  %s1437_s12 = sphi %s1489_s12, %s1745_s12  }
   0x8   : > { %p54_p0 = scmp.ne.s32.totalorder %s1441_s13, %s1437_s12  ;;  %p1523_p1 = scmp.eq.s32.totalorder %s957_s18, 0 }
   0x9   : > { %p1527_p2 = scmp.eq.s32.totalorder %s957_s18, 1  ;;  %p126_p3 = scmp.eq.s32.totalorder %s958_s19, 1 }
   0xa   : > { %s1732_s20 = scalar_select %p1523_p1, 1, 0 }
   0xb   : > { %p1533_p4 = por %p1523_p1, %p54_p0  ;;  %p959_p5 = scmp.ge.s32.totalorder %s1457_s17, 1 }
   0xc   : > { %p1538_p6 = por %p126_p3, %p54_p0  ;;  %p133_p7 = scmp.lt.s32.totalorder %s1457_s17, 3 }
   0xd   : > { %s1734_s22 = scalar_select %p1533_p4, 1, 0 }
   0xe   : > { %s1735_s23 = scalar_select %p1538_p6, 1, 0 }
   0xf   : > { %p1543_p8 = pnand %p959_p5, %p133_p7  ;;  %s1459_s25 = smov [#allocation6]  }
  0x10   : > { %s145_s26 = sshll.u32 %s1459_s25, 4  ;;  %s1460_s28 = smov [#allocation8]   ;;  %s146_s26 = int_to_ptr.vmem [resolvable:$true] %s145_s26 }
  0x11   : > { %p1176_p9 = pneg %p1543_p8  ;;  %s158_s29 = sshll.u32 %s1460_s28, 4  ;;  %s159_s29 = int_to_ptr.vmem [resolvable:$true] %s158_s29 }
  0x12   : > { %s1304_s30 = scalar_lea.vmem %s146_s26, 2048  ;;  %p1312_p5 = scmp.lt.s32.totalorder %s146_s26, %s146_s26 }
  0x13   : > { %p1552_p11 = pnand %p1176_p9, %p1523_p1  ;;  %p1305_p13 = scmp.ne.s32.totalorder %s146_s26, %s1304_s30 }
  0x14   : > { %p1313_p7 = scmp.lt.s32.totalorder %s1304_s30, %s1304_s30 }
  0x15   : > { %p1295_p12 = pneg %p1552_p11 }
  0x16   : > { %p1314_p10 = por %p1313_p7, %p1312_p5 }
  0x17   : > { %p1307_p0 = pnand %p1305_p13, %p1295_p12 }
  0x19   : > { %p1308_p3 = pneg %p1307_p0 }
  0x1b   : > { %p1315_p9 = pnand %p1314_p10, %p1308_p3 }
  0x1d   : > { %1318 = shalt.err (!%p1315_p9)
}
  0x1e   : > { %s1461_s4 = smov 64   ;;  %s1462_s5 = smov 4  }
  0x1f   : > { %1179 = dma.hbm_to_vmem [thread:$0]  (!%p1552_p11), %s1725_s1, 2048, %s146_s26, [#allocation7], %s1461_s4, %s1461_s4, %s1462_s5  }
  0x20   : > { %s1330_s8 = scalar_lea.vmem %s159_s29, 2048  ;;  %p1338_p1 = scmp.lt.s32.totalorder %s159_s29, %s159_s29 }
  0x21   : > { %p1331_p6 = scmp.ne.s32.totalorder %s159_s29, %s1330_s8  ;;  %p1339_p4 = scmp.lt.s32.totalorder %s1330_s8, %s1330_s8 }
  0x23   : > { %p1333_p13 = pnand %p1331_p6, %p1295_p12  ;;  %p1340_p5 = por %p1339_p4, %p1338_p1 }
  0x25   : > { %p1334_p0 = pneg %p1333_p13 }
  0x27   : > { %p1341_p10 = pnand %p1340_p5, %p1334_p0 }
  0x29   : > { %1344 = shalt.err (!%p1341_p10)
}
  0x2a   : > { %s1731_s9 = smov 128   ;;  %s1464_s10 = smov 8  }
  0x2b   : > { %1182 = dma.hbm_to_vmem [thread:$0]  (!%p1552_p11), %s1726_s2, 2048, %s159_s29, [#allocation7], %s1731_s9, %s1731_s9, %s1464_s10  }
  0x2c   : > { %s32_s19 = sadd.s32 1, %s1453_s16  ;;  %s41_s25 = sadd.s32 1, %s1445_s14 }
  0x2d   : > { %p34_p1 = scmp.ge.s32.totalorder %s32_s19, 2  ;;  %p48_p4 = scmp.ne.s32.totalorder %s1445_s14, %s1441_s13 }
  0x2e   : > { %p49_p6 = scmp.eq.s32.totalorder %s1457_s17, 0  ;;  %p1193_p12 = scmp.lt.s32.totalorder %s1457_s17, 2 }
  0x2f   : > { %s1751_s19 = smov (%p34_p1, %s32_s19), 0  ;;  %p1587_p7 = por %p1527_p2, %p48_p4 }
  0x30   : > { %p50_p3 = por %p49_p6, %p48_p4  ;;  %s36_s27 = ssub.s32 %s1453_s16, %s1751_s19 }
  0x31   : > { %s172_s28 = sand.u32 1, %s1445_s14   ;;  %p39_p9 = scmp.eq.s32.totalorder %s36_s27, 0 }
  0x32   : > { %s963_s29 = sshll.u32 %s172_s28, 7  ;;  %s1010_s30 = sshll.u32 %s1453_s16, 11 }
  0x33   : > { %s1596_s4 = scalar_select %p39_p9, %s1445_s14, %s41_s25  }
  0x34   : > { %s185_s7 = scalar_lea.hbm %s1724_s0, %s1010_s30  ;;  %s176_s8 = scalar_lea.vmem [#allocation3], %s963_s29 }
  0x35   : > { %s186_s11 = sshll.u32 %s176_s8, 4  ;;  %p1603_p11 = pnand %p1193_p12, %p50_p3  ;;  %s187_s11 = int_to_ptr.vmem [resolvable:$true] %s186_s11 }
  0x36   : > { %s173_s18 = scalar_lea.sflag [#allocation4], %s172_s28  ;;  %s1358_s27 = scalar_lea.vmem %s187_s11, 2048 }
  0x37   : > { %p1347_p2 = pneg %p1603_p11  ;;  %p1359_p13 = scmp.ne.s32.totalorder %s187_s11, %s1358_s27 }
  0x38   : > { %s1465_s25 = smov [#allocation3]  }
  0x39   : > { %p1361_p0 = pnand %p1359_p13, %p1347_p2  ;;  %s1363_s9 = sshll.u32 %s1465_s25, 4  ;;  %s1364_s9 = int_to_ptr.vmem [resolvable:$false] %s1363_s9 }
  0x3a   : > { %s1365_s30 = scalar_lea.vmem %s1364_s9, 4096  ;;  %p1366_p10 = scmp.lt.s32.totalorder %s187_s11, %s1364_s9 }
  0x3b   : > { %p1362_p5 = pneg %p1361_p0  ;;  %p1367_p1 = scmp.lt.s32.totalorder %s1365_s30, %s1358_s27 }
  0x3d   : > { %p1368_p4 = por %p1367_p1, %p1366_p10 }
  0x3f   : > { %p1369_p6 = pnand %p1368_p4, %p1362_p5 }
  0x41   : > { %1372 = shalt.err (!%p1369_p6)
}
  0x42   : > { %s1740_s29 = smov 128   ;;  %198 = sbr.rel (%p1543_p8) target bundleno = 576 (0x240), region = 32 }
  0x43   : > { %1186 = dma.hbm_to_vmem [thread:$0]  (!%p1603_p11), %s185_s7, 2048, %s187_s11, %s173_s18, %s1740_s29, %s1740_s29, %s1464_s10  }
  0x44   : > { %s1617_s28 = sand.u32 (!%p1543_p8), 1, %s1441_s13   ;;  %p1741_p12 = scmp.ne.s32.totalorder (!%p1543_p8), %s1734_s22, 0 }
  0x45   : > { %s968_s9 = sshll.u32 (!%p1543_p8), %s1617_s28, 7  ;;  %s201_s5 = scalar_lea.sflag (!%p1543_p8), [#allocation4], %s1617_s28 }
  0x46   : > { %s1623_s6 = scalar_lea.vmem (!%p1543_p8), [#allocation3], %s968_s9 }
  0x47   : > { %1424 = dma.done.wait (%p1741_p12), %s201_s5, 2048  }
  0x48   : > { %1426 = vsyncadd (%p1741_p12), %s201_s5, 4294965248  ;;  %p1742_p3 = scmp.ne.s32.totalorder %s1732_s20, 0 }
  0x4a   : > { %1428 = dma.done.wait (%p1742_p3), [#allocation7], 4096  }
  0x4b   : > { %1430 = vsyncadd (%p1742_p3), [#allocation7], 4294963200  ;;  %v1253_v0 = vld [vmem:[#allocation6 + $0x78] sm:$0xff]   ;;  %v1255_v2 = vld [vmem:[#allocation6 + $0x70] sm:$0xff]   ;;  %s1651_s20 = scalar_lea.vmem [#allocation9], %s968_s9  ;;  %s1011_s22 = sshll.u32 %s1449_s15, 11 }
  0x4c   : > { %v1254_v1 = vld [vmem:[#allocation6 + $0x38] sm:$0xff]   ;;  %1012 = vmatprep.subr.bf16.mxu0 %v1253_v0  ;;  %v1256_v3 = vld [vmem:[#allocation6 + $0x30] sm:$0xff]   ;;  %v1257_v4 = vld [vmem:[#allocation6 + $0x68] sm:$0xff]   ;;  %s854_s24 = sshll.u32 %s1651_s20, 4  ;;  %s1672_s8 = scalar_lea.hbm %s1727_s3, %s1011_s22  ;;  %s1674_s24 = int_to_ptr.vmem [resolvable:$true] %s854_s24 }
  0x4d   : > { %1013 = vmatpush3.bf16.msra.mxu0 %v1254_v1  ;;  %v1258_v5 = vld [vmem:[#allocation6 + $0x28] sm:$0xff]   ;;  %v1259_v6 = vld [vmem:[#allocation6 + $0x60] sm:$0xff]   ;;  %v1261_v8 = vld [vmem:[#allocation6 + $0x58] sm:$0xff]   ;;  %s841_s11 = scalar_lea.sflag [#allocation5], %s1617_s28  ;;  %s1373_s21 = scalar_lea.vmem %s1674_s24, 2048 }
  0x4e   : > { %1014 = vmatprep.subr.bf16.mxu0 %v1255_v2  ;;  %v1260_v7 = vld [vmem:[#allocation6 + $0x20] sm:$0xff]   ;;  %v1262_v9 = vld [vmem:[#allocation6 + $0x18] sm:$0xff]   ;;  %v1263_v10 = vld [vmem:[#allocation6 + $0x50] sm:$0xff]   ;;  %p1374_p8 = scmp.ne.s32.totalorder %s1674_s24, %s1373_s21  ;;  %s1466_s15 = smov [#allocation9]  }
  0x4f   : > { %v1271_v11 = vld [vmem:[%s1623_s6 + $0x4] ss:$8 sps:$4 sm:$0xff]   ;;  %v1264_v12 = vld [vmem:[#allocation6 + $0x10] sm:$0xff]   ;;  %v662_v16 = vld [vmem:[#allocation8 + $0x78] sm:$0xff]  ;;  %s1377_s18 = sshll.u32 %s1466_s15, 4  ;;  %s1378_s18 = int_to_ptr.vmem [resolvable:$false] %s1377_s18 }
  0x50   : > { %531 = vmatprep.mubr.bf16.mxu0 %v1271_v11  ;;  %v1265_v13 = vld [vmem:[#allocation6 + $0x48] sm:$0xff]   ;;  %v1267_v15 = vld [vmem:[#allocation6 + $0x40] sm:$0xff]   ;;  %1108 = vmatprep.subr.mxu1 %v662_v16  ;;  %v661_v18 = vld [vmem:[#allocation8 + $0x70] sm:$0xff]  ;;  %p1375_p9 = pnand %p1374_p8, %p1587_p7  ;;  %s1379_s27 = scalar_lea.vmem %s1378_s18, 4096 }
  0x51   : > { %1015 = vmatpush3.bf16.msra.mxu0 %v1256_v3  ;;  %v1266_v14 = vld [vmem:[#allocation6 + $0x8] sm:$0xff]   ;;  %v1268_v17 = vld [vmem:[#allocation6] sm:$0xff]   ;;  %1109 = vmatpush3.msra.mxu1 %v662_v16  ;;  %v1272_v22 = vld [vmem:[%s1623_s6 + $0x14] ss:$8 sps:$4 sm:$0xff]   ;;  %p1380_p2 = scmp.lt.s32.totalorder %s1674_s24, %s1378_s18  ;;  %p1381_p13 = scmp.lt.s32.totalorder %s1379_s27, %s1373_s21 }
  0x52   : > { %1016 = vmatprep.subr.bf16.mxu0 %v1257_v4  ;;  %v660_v19 = vld [vmem:[#allocation8 + $0x68] sm:$0xff]  ;;  %1110 = vmatprep.subr.mxu1 %v661_v18  ;;  %v659_v21 = vld [vmem:[#allocation8 + $0x60] sm:$0xff]  ;;  %v658_v23 = vld [vmem:[#allocation8 + $0x58] sm:$0xff]  ;;  %p1376_p11 = pneg %p1375_p9 }
  0x53   : > { %v1269_v20 = vld [vmem:[%s1623_s6] ss:$8 sps:$4 sm:$0xff]   ;;  %1111 = vmatpush3.msra.mxu1 %v661_v18  ;;  %v657_v24 = vld [vmem:[#allocation8 + $0x50] sm:$0xff]  ;;  %v1275_v28 = vld [vmem:[%s1623_s6 + $0x24] ss:$8 sps:$4 sm:$0xff]   ;;  %p1382_p0 = por %p1381_p13, %p1380_p2 }
  0x54   : > { %1112 = vmatprep.subr.mxu1 %v660_v19  ;;  %v656_v25 = vld [vmem:[#allocation8 + $0x48] sm:$0xff]  ;;  %v1274_v26 = vld [vmem:[%s1623_s6 + $0x10] ss:$8 sps:$4 sm:$0xff]   ;;  %v655_v27 = vld [vmem:[#allocation8 + $0x40] sm:$0xff] }
  0x55   : > { %1017 = vmatpush3.bf16.msra.mxu0 %v1258_v5  ;;  %1113 = vmatpush3.msra.mxu1 %v660_v19  ;;  %v654_v29 = vld [vmem:[#allocation8 + $0x38] sm:$0xff]  ;;  %v653_v30 = vld [vmem:[#allocation8 + $0x30] sm:$0xff]  ;;  %v652_v31 = vld [vmem:[#allocation8 + $0x28] sm:$0xff]  ;;  %p1383_p5 = pnand %p1382_p0, %p1376_p11 }
  0x56   : > { %1018 = vmatprep.subr.bf16.mxu0 %v1259_v6  ;;  %1114 = vmatprep.subr.mxu1 %v659_v21  ;;  %v1277_v32 = vld [vmem:[%s1623_s6 + $0x20] ss:$8 sps:$4 sm:$0xff]   ;;  %v1278_v34 = vld [vmem:[%s1623_s6 + $0x34] ss:$8 sps:$4 sm:$0xff]   ;;  %v1280_v35 = vld [vmem:[%s1623_s6 + $0x30] ss:$8 sps:$4 sm:$0xff]  }
  0x57   : > { %1115 = vmatpush3.msra.mxu1 %v659_v21  ;;  %v651_v33 = vld [vmem:[#allocation8 + $0x20] sm:$0xff]  ;;  %v1284_v38 = vld [vmem:[%s1623_s6 + $0x54] ss:$8 sps:$4 sm:$0xff]   ;;  %v1286_v39 = vld [vmem:[%s1623_s6 + $0x50] ss:$8 sps:$4 sm:$0xff]  }
  0x58   : > { %1116 = vmatprep.subr.mxu1 %v658_v23  ;;  %v1281_v36 = vld [vmem:[%s1623_s6 + $0x44] ss:$8 sps:$4 sm:$0xff]   ;;  %v1283_v37 = vld [vmem:[%s1623_s6 + $0x40] ss:$8 sps:$4 sm:$0xff]   ;;  %v1290_v42 = vld [vmem:[%s1623_s6 + $0x74] ss:$8 sps:$4 sm:$0xff]  }
  0x59   : > { %1019 = vmatpush3.bf16.msra.mxu0 %v1260_v7  ;;  %1117 = vmatpush3.msra.mxu1 %v658_v23  ;;  %v1287_v40 = vld [vmem:[%s1623_s6 + $0x64] ss:$8 sps:$4 sm:$0xff]   ;;  %v1289_v41 = vld [vmem:[%s1623_s6 + $0x60] ss:$8 sps:$4 sm:$0xff]   ;;  %v1292_v43 = vld [vmem:[%s1623_s6 + $0x70] ss:$8 sps:$4 sm:$0xff]  }
  0x5a   : > { %1020 = vmatprep.subr.bf16.mxu0 %v1261_v8  ;;  %1118 = vmatprep.subr.mxu1 %v657_v24  ;;  %v650_v44 = vld [vmem:[#allocation8 + $0x18] sm:$0xff]  ;;  %v649_v45 = vld [vmem:[#allocation8 + $0x10] sm:$0xff]  ;;  %v648_v46 = vld [vmem:[#allocation8 + $0x8] sm:$0xff] }
  0x5b   : > { %1119 = vmatpush3.msra.mxu1 %v657_v24  ;;  %v647_v47 = vld [vmem:[#allocation8] sm:$0xff] }
  0x5c   : > { %1120 = vmatprep.subr.mxu1 %v656_v25 }
  0x5d   : > { %1021 = vmatpush3.bf16.msra.mxu0 %v1262_v9  ;;  %1121 = vmatpush3.msra.mxu1 %v656_v25 }
  0x5e   : > { %1022 = vmatprep.subr.bf16.mxu0 %v1263_v10  ;;  %1122 = vmatprep.subr.mxu1 %v655_v27 }
  0x5f   : > { %1123 = vmatpush3.msra.mxu1 %v655_v27 }
  0x60   : > { %1124 = vmatprep.subr.mxu1 %v654_v29 }
  0x61   : > { %1023 = vmatpush3.bf16.msra.mxu0 %v1264_v12  ;;  %1125 = vmatpush3.msra.mxu1 %v654_v29 }
  0x62   : > { %1024 = vmatprep.subr.bf16.mxu0 %v1265_v13  ;;  %1126 = vmatprep.subr.mxu1 %v653_v30 }
  0x63   : > { %1127 = vmatpush3.msra.mxu1 %v653_v30 }
  0x64   : > { %1128 = vmatprep.subr.mxu1 %v652_v31 }
  0x65   : > { %1025 = vmatpush3.bf16.msra.mxu0 %v1266_v14  ;;  %1129 = vmatpush3.msra.mxu1 %v652_v31 }
  0x66   : > { %1026 = vmatprep.subr.bf16.mxu0 %v1267_v15  ;;  %1130 = vmatprep.subr.mxu1 %v651_v33 }
  0x67   : > { %1131 = vmatpush3.msra.mxu1 %v651_v33 }
  0x68   : > { %1132 = vmatprep.subr.mxu1 %v650_v44 }
  0x69   : > { %1027 = vmatpush3.bf16.msra.mxu0 %v1268_v17  ;;  %1133 = vmatpush3.msra.mxu1 %v650_v44 }
  0x6a   : > { %1134 = vmatprep.subr.mxu1 %v649_v45 }
  0x6b   : > { %1135 = vmatpush3.msra.mxu1 %v649_v45 }
  0x6c   : > { %532 = vmatmul.mubr.bf16.vlgmr.msra.gmra.mxu0 %v1269_v20  ;;  %1136 = vmatprep.subr.mxu1 %v648_v46 }
  0x6d   : > { %539 = vmatprep.mubr.bf16.mxu0 %v1272_v22  ;;  %1137 = vmatpush3.msra.mxu1 %v648_v46 }
  0x6e   : > { %1138 = vmatprep.subr.mxu1 %v647_v47 }
  0x6f   : > { %1139 = vmatpush3.msra.mxu1 %v647_v47 }
  0x74   : > { %540 = vmatmul.mubr.bf16.gmra.mxu0 %v1274_v26 }
  0x75   : > { %547 = vmatprep.mubr.bf16.mxu0 %v1275_v28 }
  0x7c   : > { %548 = vmatmul.mubr.bf16.gmra.mxu0 %v1277_v32 }
  0x7d   : > { %555 = vmatprep.mubr.bf16.mxu0 %v1278_v34 }
  0x84   : > { %556 = vmatmul.mubr.bf16.gmra.mxu0 %v1280_v35 }
  0x85   : > { %563 = vmatprep.mubr.bf16.mxu0 %v1281_v36 }
  0x8c   : > { %564 = vmatmul.mubr.bf16.gmra.mxu0 %v1283_v37 }
  0x8d   : > { %571 = vmatprep.mubr.bf16.mxu0 %v1284_v38 }
  0x94   : > { %572 = vmatmul.mubr.bf16.gmra.mxu0 %v1286_v39 }
  0x95   : > { %579 = vmatprep.mubr.bf16.mxu0 %v1287_v40 }
  0x9c   : > { %580 = vmatmul.mubr.bf16.gmra.mxu0 %v1289_v41 }
  0x9d   : > { %587 = vmatprep.mubr.bf16.mxu0 %v1290_v42 }
  0xa4   : > { %588 = vmatmul.mubr.bf16.gmra.mxu0 %v1292_v43 }
 0x12c   : > { %v1028_v48 = vpop.f32.mrf.mxu0 }
 0x12e   : > { %v1029_v49 = vpop.f32.mrf.mxu0 }
 0x12f   : > { %v1030_v50 = vadd.f32 %v1029_v49, %v1028_v48 }
 0x130   : > { %v1031_v51 = vpop.f32.mrf.mxu0 }
 0x131   : > { %1140 = vmatprep.mubr.f32.mxu1 %v1030_v50 }
 0x132   : > { %v1032_v52 = vpop.f32.mrf.mxu0 }
 0x133   : > { %v1033_v53 = vadd.f32 %v1032_v52, %v1031_v51 }
 0x134   : > { %v1034_v54 = vpop.f32.mrf.mxu0 }
 0x135   : > { %1141 = vmatmul.mubr.f32.vlgmr.msra.gmra.mxu1 %v1033_v53 }
 0x136   : > { %v1035_v55 = vpop.f32.mrf.mxu0 }
 0x137   : > { %v1036_v56 = vadd.f32 %v1035_v55, %v1034_v54 }
 0x138   : > { %v1037_v57 = vpop.f32.mrf.mxu0 }
 0x139   : > { %1143 = vmatprep.mubr.f32.mxu1 %v1036_v56 }
 0x13a   : > { %v1038_v58 = vpop.f32.mrf.mxu0 }
 0x13b   : > { %v1039_v59 = vadd.f32 %v1038_v58, %v1037_v57 }
 0x13c   : > { %v1040_v60 = vpop.f32.mrf.mxu0 }
 0x13d   : > { %1144 = vmatmul.mubr.f32.gmra.mxu1 %v1039_v59 }
 0x13e   : > { %v1041_v61 = vpop.f32.mrf.mxu0 }
 0x13f   : > { %v1042_v62 = vadd.f32 %v1041_v61, %v1040_v60 }
 0x140   : > { %v1043_v63 = vpop.f32.mrf.mxu0 }
 0x141   : > { %1146 = vmatprep.mubr.f32.mxu1 %v1042_v62 }
 0x142   : > { %v1044_v0 = vpop.f32.mrf.mxu0 }
 0x143   : > { %v1045_v1 = vadd.f32 %v1044_v0, %v1043_v63 }
 0x144   : > { %v1046_v2 = vpop.f32.mrf.mxu0 }
 0x145   : > { %1147 = vmatmul.mubr.f32.gmra.mxu1 %v1045_v1 }
 0x146   : > { %v1047_v3 = vpop.f32.mrf.mxu0 }
 0x147   : > { %v1048_v4 = vadd.f32 %v1047_v3, %v1046_v2 }
 0x148   : > { %v1049_v5 = vpop.f32.mrf.mxu0 }
 0x149   : > { %1149 = vmatprep.mubr.f32.mxu1 %v1048_v4 }
 0x14a   : > { %v1050_v6 = vpop.f32.mrf.mxu0 }
 0x14b   : > { %v1051_v7 = vadd.f32 %v1050_v6, %v1049_v5 }
 0x14c   : > { %v1052_v8 = vpop.f32.mrf.mxu0 }
 0x14d   : > { %1150 = vmatmul.mubr.f32.gmra.mxu1 %v1051_v7 }
 0x14e   : > { %v1053_v9 = vpop.f32.mrf.mxu0 }
 0x14f   : > { %v1054_v10 = vadd.f32 %v1053_v9, %v1052_v8 }
 0x150   : > { %v1055_v11 = vpop.f32.mrf.mxu0 }
 0x151   : > { %1152 = vmatprep.mubr.f32.mxu1 %v1054_v10 }
 0x152   : > { %v1056_v12 = vpop.f32.mrf.mxu0 }
 0x153   : > { %v1057_v13 = vadd.f32 %v1056_v12, %v1055_v11 }
 0x154   : > { %v1058_v14 = vpop.f32.mrf.mxu0 }
 0x155   : > { %1153 = vmatmul.mubr.f32.gmra.mxu1 %v1057_v13 }
 0x156   : > { %v1059_v15 = vpop.f32.mrf.mxu0 }
 0x157   : > { %v1060_v16 = vadd.f32 %v1059_v15, %v1058_v14 }
 0x158   : > { %v1061_v17 = vpop.f32.mrf.mxu0 }
 0x159   : > { %1155 = vmatprep.mubr.f32.mxu1 %v1060_v16 }
 0x15a   : > { %v1062_v18 = vpop.f32.mrf.mxu0 }
 0x15b   : > { %v1063_v19 = vadd.f32 %v1062_v18, %v1061_v17 }
 0x15c   : > { %v1064_v20 = vpop.f32.mrf.mxu0 }
 0x15d   : > { %1156 = vmatmul.mubr.f32.gmra.mxu1 %v1063_v19 }
 0x15e   : > { %v1065_v21 = vpop.f32.mrf.mxu0 }
 0x15f   : > { %v1066_v22 = vadd.f32 %v1065_v21, %v1064_v20 }
 0x160   : > { %v1067_v23 = vpop.f32.mrf.mxu0 }
 0x161   : > { %1158 = vmatprep.mubr.f32.mxu1 %v1066_v22 }
 0x162   : > { %v1068_v24 = vpop.f32.mrf.mxu0 }
 0x163   : > { %v1069_v25 = vadd.f32 %v1068_v24, %v1067_v23 }
 0x164   : > { %v1070_v26 = vpop.f32.mrf.mxu0 }
 0x165   : > { %1159 = vmatmul.mubr.f32.gmra.mxu1 %v1069_v25 }
 0x166   : > { %v1071_v27 = vpop.f32.mrf.mxu0 }
 0x167   : > { %v1072_v28 = vadd.f32 %v1071_v27, %v1070_v26 }
 0x168   : > { %v1073_v29 = vpop.f32.mrf.mxu0 }
 0x169   : > { %1161 = vmatprep.mubr.f32.mxu1 %v1072_v28 }
 0x16a   : > { %v1074_v30 = vpop.f32.mrf.mxu0 }
 0x16b   : > { %v1075_v31 = vadd.f32 %v1074_v30, %v1073_v29 }
 0x16d   : > { %1162 = vmatmul.mubr.f32.gmra.mxu1 %v1075_v31 }
 0x1f5   : > { %v1142_v32 = vpop.f32.mrf.mxu1 }
 0x1f6   : > { %v809_v33 = vmax.f32 %v1142_v32, 0.0 }
 0x1f7   : > { %v729_v34 = vpop.f32.mrf.mxu1 }
 0x1f8   : > { %825 = vst [vmem:[%s1651_s20 + $0x8] sm:$0xff] %v809_v33  ;;  %v808_v35 = vmax.f32 %v729_v34, 0.0 }
 0x1fa   : > { %824 = vst [vmem:[%s1651_s20] sm:$0xff] %v808_v35 }
 0x1fd   : > { %v1145_v36 = vpop.f32.mrf.mxu1 }
 0x1fe   : > { %v811_v37 = vmax.f32 %v1145_v36, 0.0 }
 0x1ff   : > { %v739_v38 = vpop.f32.mrf.mxu1 }
 0x200   : > { %827 = vst [vmem:[%s1651_s20 + $0x18] sm:$0xff] %v811_v37  ;;  %v810_v39 = vmax.f32 %v739_v38, 0.0 }
 0x202   : > { %826 = vst [vmem:[%s1651_s20 + $0x10] sm:$0xff] %v810_v39 }
 0x205   : > { %v1148_v40 = vpop.f32.mrf.mxu1 }
 0x206   : > { %v813_v41 = vmax.f32 %v1148_v40, 0.0 }
 0x207   : > { %v749_v42 = vpop.f32.mrf.mxu1 }
 0x208   : > { %829 = vst [vmem:[%s1651_s20 + $0x28] sm:$0xff] %v813_v41  ;;  %v812_v43 = vmax.f32 %v749_v42, 0.0 }
 0x20a   : > { %828 = vst [vmem:[%s1651_s20 + $0x20] sm:$0xff] %v812_v43 }
 0x20d   : > { %v1151_v44 = vpop.f32.mrf.mxu1 }
 0x20e   : > { %v815_v45 = vmax.f32 %v1151_v44, 0.0 }
 0x20f   : > { %v759_v46 = vpop.f32.mrf.mxu1 }
 0x210   : > { %831 = vst [vmem:[%s1651_s20 + $0x38] sm:$0xff] %v815_v45  ;;  %v814_v47 = vmax.f32 %v759_v46, 0.0 }
 0x212   : > { %830 = vst [vmem:[%s1651_s20 + $0x30] sm:$0xff] %v814_v47 }
 0x215   : > { %v1154_v48 = vpop.f32.mrf.mxu1 }
 0x216   : > { %v817_v49 = vmax.f32 %v1154_v48, 0.0 }
 0x217   : > { %v769_v50 = vpop.f32.mrf.mxu1 }
 0x218   : > { %833 = vst [vmem:[%s1651_s20 + $0x48] sm:$0xff] %v817_v49  ;;  %v816_v51 = vmax.f32 %v769_v50, 0.0 }
 0x21a   : > { %832 = vst [vmem:[%s1651_s20 + $0x40] sm:$0xff] %v816_v51 }
 0x21d   : > { %v1157_v52 = vpop.f32.mrf.mxu1 }
 0x21e   : > { %v819_v53 = vmax.f32 %v1157_v52, 0.0 }
 0x21f   : > { %v779_v54 = vpop.f32.mrf.mxu1 }
 0x220   : > { %835 = vst [vmem:[%s1651_s20 + $0x58] sm:$0xff] %v819_v53  ;;  %v818_v55 = vmax.f32 %v779_v54, 0.0 }
 0x222   : > { %834 = vst [vmem:[%s1651_s20 + $0x50] sm:$0xff] %v818_v55 }
 0x225   : > { %v1160_v56 = vpop.f32.mrf.mxu1 }
 0x226   : > { %v821_v57 = vmax.f32 %v1160_v56, 0.0 }
 0x227   : > { %v789_v58 = vpop.f32.mrf.mxu1 }
 0x228   : > { %837 = vst [vmem:[%s1651_s20 + $0x68] sm:$0xff] %v821_v57  ;;  %v820_v59 = vmax.f32 %v789_v58, 0.0 }
 0x22a   : > { %836 = vst [vmem:[%s1651_s20 + $0x60] sm:$0xff] %v820_v59 }
 0x22d   : > { %v1163_v60 = vpop.f32.mrf.mxu1 }
 0x22e   : > { %v823_v61 = vmax.f32 %v1163_v60, 0.0 }
 0x22f   : > { %v799_v62 = vpop.f32.mrf.mxu1 }
 0x230   : > { %839 = vst [vmem:[%s1651_s20 + $0x78] sm:$0xff] %v823_v61  ;;  %v822_v63 = vmax.f32 %v799_v62, 0.0 }
 0x232   : > { %838 = vst [vmem:[%s1651_s20 + $0x70] sm:$0xff] %v822_v63 }
 0x233   : > { %1386 = shalt.err (!%p1383_p5)
}
 0x234   : > { %s1387_s25 = scalar_lea.hbm %s1672_s8, 2048  ;;  %s1391_s9 = scalar_lea.hbm %s1727_s3, 4096 }
 0x235   : > { %p1388_p10 = scmp.ne.s32.totalorder %s1672_s8, %s1387_s25  ;;  %p1392_p6 = scmp.lt.s32.totalorder %s1672_s8, %s1727_s3 }
 0x236   : > { %p1393_p12 = scmp.lt.s32.totalorder %s1391_s9, %s1387_s25 }
 0x237   : > { %p1389_p1 = pnand %p1388_p10, %p1587_p7 }
 0x238   : > { %p1394_p3 = por %p1393_p12, %p1392_p6 }
 0x239   : > { %p1390_p4 = pneg %p1389_p1 }
 0x23b   : > { %p1395_p8 = pnand %p1394_p3, %p1390_p4 }
 0x23d   : > { %1398 = shalt.err (!%p1395_p8)
}
 0x23e   : > { %s1467_s20 = smov 128   ;;  %s1468_s22 = smov 8  }
 0x23f   : > { %1174 = dma.vmem_to_hbm [thread:$0]  (%p1587_p7), %s1674_s24, 2048, %s1672_s8, %s841_s11, %s1467_s20, %s1467_s20, %s1468_s22  }
 0x240 PF: > { %s869_s10 = sand.u32 1, %s1437_s12   ;;  %p1743_p9 = scmp.ne.s32.totalorder %s1735_s23, 0 }
 0x241   : > { %p1744_p11 = scmp.ge.s32.totalorder %s1457_s17, 2  ;;  %s870_s7 = scalar_lea.sflag [#allocation5], %s869_s10 }
 0x243   : > { %p1188_p2 = pnand %p1744_p11, %p1743_p9 }
 0x245   : > { %p1189_p13 = pneg %p1188_p2 }
 0x247   : > { %1432 = dma.done.wait (%p1189_p13), %s870_s7, 2048  }
 0x248   : > { %1434 = vsyncadd (%p1189_p13), %s870_s7, 4294965248  ;;  %s20_s17 = sadd.s32 1, %s1457_s17   ;;  %s1745_s12 = smov %s1441_s13 }
 0x249   : > { %p17_p0 = scmp.ge.s32.totalorder %s20_s17, 4   ;;  %s1746_s13 = smov %s1445_s14 }
 0x24a   : > { %s1747_s14 = smov %s1596_s4  ;;  %s1748_s15 = smov %s1453_s16 }
 0x24b   : > { %s1749_s16 = smov %s1751_s19  ;;  %19 = sbr.rel (!%p17_p0) target bundleno = 7 (0x7), region = 93 }
 0x250   :  { %875 = vsyncpa [#allocation4], 1 }
 0x251   :  { %877 = vsyncpa [#allocation4 + $0x1], 1 }
 0x252   :  { %878 = vsyncpa [#allocation7], 1 }
 0x253   :  { %879 = vsyncpa [#allocation5], 1 }
 0x254   :  { %881 = vsyncpa [#allocation5 + $0x1], 1 }

</bundles_post_ra>
